<compile_context>
chip_gen: v7x
topology: tpu7x:2x2x1
jax: 0.10.0
libtpu: 0.0.40
codegen_flags: <defaults>
</compile_context>

<pallas_src>
import functools

import jax
import jax.numpy as jnp
from jax.experimental import pallas as pl
from jax.experimental.pallas import tpu as pltpu


def _window_sum(xp, k):
    """Sliding-window sum of width k along axis 0 of an (Lp, C) f32 value.

    Log-doubling: build partial sums of power-of-two widths, then combine
    them following the binary decomposition of k.  O(log k) adds instead of
    O(k)."""
    Lp = xp.shape[0]
    out_len = Lp - k + 1
    if k == 1:
        return xp
    sums = {1: xp}
    w = 1
    while 2 * w <= k:
        s = sums[w]
        n = s.shape[0]
        sums[2 * w] = s[: n - w] + s[w:]
        w *= 2
    acc = None
    offset = 0
    rem = k
    while rem > 0:
        p = 1 << (rem.bit_length() - 1)          # largest power of two <= rem
        part = sums[p][offset : offset + out_len]
        acc = part if acc is None else acc + part
        offset += p
        rem -= p
    return acc


def _decomp_kernel(x_ref, res_ref, mean_ref, pad_scr, *, kernel_size):
    # x_ref:    (L, Ct)  one batch element, one channel tile
    # res_ref:  (L, Ct)  residual (x - moving_mean)
    # mean_ref: (L, Ct)  moving_mean
    # pad_scr:  (F + L + pad, Ct) f32 VMEM scratch holding the edge-replicated
    #           series.  F = pad rounded up to 8 so every store below starts
    #           at an aligned sublane offset.
    L, C = x_ref.shape
    pad = (kernel_size - 1) // 2
    x = x_ref[...].astype(jnp.float32)

    if pad == 0:
        mean = x
    else:
        F = ((pad + 7) // 8) * 8
        Ls = pad_scr.shape[0]                     # == F + L + pad
        # Build the replicate-padded series entirely in VMEM (aligned stores).
        pad_scr[...] = jnp.broadcast_to(x[L - 1 : L, :], (Ls, C))   # tail fill
        pad_scr[0:F, :] = jnp.broadcast_to(x[0:1, :], (F, C))       # head fill
        pad_scr[F : F + L, :] = x                                   # the series
        # Window for output row t covers scratch rows [F - pad + t, F + pad + t].
        xp = pad_scr[F - pad : F + L + pad, :]                      # (L + 2*pad, C)
        mean = _window_sum(xp, kernel_size) * (1.0 / kernel_size)

    mean_ref[...] = mean.astype(mean_ref.dtype)
    res_ref[...] = (x - mean).astype(res_ref.dtype)


@functools.partial(jax.jit, static_argnames=("kernel_size",))
def series_decomp(x, kernel_size):
    """Series decomposition: returns (res, moving_mean), both shaped like x.

    Matches the PyTorch module: replicate-pad both ends by (k-1)//2 and apply
    AvgPool1d(kernel_size, stride=1, padding=0).  kernel_size must be odd --
    for even k the PyTorch module itself fails with a shape mismatch in
    `x - moving_mean`.
    """
    if kernel_size < 1 or kernel_size % 2 == 0:
        raise ValueError(
            f"series_decomp requires an odd kernel_size >= 1 (got {kernel_size}); "
            "the reference PyTorch module raises a shape error for even sizes.")

    B, L, C = x.shape
    pad = (kernel_size - 1) // 2
    F = ((pad + 7) // 8) * 8
    Ls = F + L + pad if pad > 0 else L            # scratch rows

    # Channel tiling: lane-dense tiles (multiple of 128) when possible,
    # capped at 512 lanes to keep per-step VMEM residency modest on v7x;
    # otherwise the full channel dim (BlockSpec full-extent rule for C < 128).
    # TODO(synk): for C < 128 the stores are lane-masked; a lane-dense
    # repacking upstream would help but would add its own HBM pass here.
    if C % 128 == 0:
        c_tile = min(C, 512)
        while C % c_tile:
            c_tile -= 128
    else:
        c_tile = C
    num_c = C // c_tile

    kernel = functools.partial(_decomp_kernel, kernel_size=kernel_size)
    blk = lambda b, c: (b, 0, c)

    res, mean = pl.pallas_call(
        kernel,
        out_shape=(
            jax.ShapeDtypeStruct((B, L, C), x.dtype),
            jax.ShapeDtypeStruct((B, L, C), x.dtype),
        ),
        grid_spec=pltpu.PrefetchScalarGridSpec(
            num_scalar_prefetch=0,
            grid=(B, num_c),
            in_specs=[pl.BlockSpec((pl.Squeezed(), L, c_tile), blk)],
            out_specs=[
                pl.BlockSpec((pl.Squeezed(), L, c_tile), blk),
                pl.BlockSpec((pl.Squeezed(), L, c_tile), blk),
            ],
            scratch_shapes=[pltpu.VMEM((Ls, c_tile), jnp.float32)],
        ),
        compiler_params=pltpu.CompilerParams(
            dimension_semantics=("parallel", "parallel")
        ),
    )(x)
    return res, mean


def _reference(x, kernel_size):
    """Pure-JAX reference mirroring the PyTorch forward (odd kernel_size)."""
    pad = (kernel_size - 1) // 2
    front = jnp.repeat(x[:, 0:1, :], pad, axis=1)
    end = jnp.repeat(x[:, -1:, :], pad, axis=1)
    xpad = jnp.concatenate([front, x, end], axis=1)
    L_out = xpad.shape[1] - kernel_size + 1
    windows = jnp.stack(
        [xpad[:, j : j + L_out, :] for j in range(kernel_size)], axis=0)
    mean = jnp.mean(windows, axis=0)
    res = x[:, :L_out, :] - mean
    return res, mean


if __name__ == "__main__":
    key = jax.random.PRNGKey(0)
    k1, k2 = jax.random.split(key)

    # Case 1: DLinear default kernel_size=25, lane-dense channels,
    # exercises the channel-tiling path (c_tile=512, num_c=2).
    B, L, C = 2, 48, 1024
    x = jax.random.normal(k1, (B, L, C), dtype=jnp.float32)
    res, mean = series_decomp(x, kernel_size=25)
    jax.block_until_ready((res, mean))
    res_ref, mean_ref = _reference(x, 25)
    assert jnp.allclose(res, res_ref, atol=1e-5, rtol=1e-5)
    assert jnp.allclose(mean, mean_ref, atol=1e-5, rtol=1e-5)

    # Case 2: small channel count (C < 128 -> full-C block), small odd kernel.
    x2 = jax.random.normal(k2, (2, 16, 8), dtype=jnp.float32)
    res2, mean2 = series_decomp(x2, kernel_size=5)
    jax.block_until_ready((res2, mean2))
    res2_ref, mean2_ref = _reference(x2, 5)
    assert jnp.allclose(res2, res2_ref, atol=1e-5, rtol=1e-5)
    assert jnp.allclose(mean2, mean2_ref, atol=1e-5, rtol=1e-5)

    print("KERNEL_OK")
</pallas_src>

<mosaic_0001>
module attributes {stable_mosaic.version = 11 : i64} {
  func.func @_decomp_kernel(%arg0: i32, %arg1: i32, %arg2: memref<1x48x512xf32, #tpu.memory_space<vmem>>, %arg3: memref<1x48x512xf32, #tpu.memory_space<vmem>>, %arg4: memref<1x48x512xf32, #tpu.memory_space<vmem>>, %arg5: memref<76x512xf32, #tpu.memory_space<vmem>>) attributes {dimension_semantics = [#tpu.dimension_semantics<parallel>, #tpu.dimension_semantics<parallel>], iteration_bounds = array<i64: 2, 2>, scalar_prefetch = 0 : i64, scratch_operands = 1 : i64, tpu.core_type = #tpu.core_type<tc>, window_params = [{transform_indices = @transform_0, window_bounds = array<i64: 1, 48, 512>}, {transform_indices = @transform_1, window_bounds = array<i64: 1, 48, 512>}, {transform_indices = @transform_2, window_bounds = array<i64: 1, 48, 512>}]} {
    %c0 = arith.constant 0 : index
    %c0_0 = arith.constant 0 : index
    %c0_1 = arith.constant 0 : index
    %0 = vector.load %arg2[%c0, %c0_0, %c0_1] : memref<1x48x512xf32, #tpu.memory_space<vmem>>, vector<1x48x512xf32>
    %1 = vector.shape_cast %0 : vector<1x48x512xf32> to vector<48x512xf32>
    %2 = vector.extract_strided_slice %1 {offsets = [47, 0], sizes = [1, 512], strides = [1, 1]} : vector<48x512xf32> to vector<1x512xf32>
    %3 = vector.shape_cast %2 : vector<1x512xf32> to vector<1x512xf32>
    %4 = vector.broadcast %3 : vector<1x512xf32> to vector<76x512xf32>
    %c0_2 = arith.constant 0 : index
    %c0_3 = arith.constant 0 : index
    %5 = vector.load %arg5[%c0_2, %c0_3] : memref<76x512xf32, #tpu.memory_space<vmem>>, vector<76x512xf32>
    tpu.vector_store %arg5[%c0_2, %c0_3], %4 {strides = array<i32>} : memref<76x512xf32, #tpu.memory_space<vmem>>, vector<76x512xf32>,
    %6 = vector.extract_strided_slice %1 {offsets = [0, 0], sizes = [1, 512], strides = [1, 1]} : vector<48x512xf32> to vector<1x512xf32>
    %7 = vector.shape_cast %6 : vector<1x512xf32> to vector<1x512xf32>
    %8 = vector.broadcast %7 : vector<1x512xf32> to vector<16x512xf32>
    %c0_4 = arith.constant 0 : index
    %c0_5 = arith.constant 0 : index
    %9 = vector.load %arg5[%c0_4, %c0_5] : memref<76x512xf32, #tpu.memory_space<vmem>>, vector<16x512xf32>
    tpu.vector_store %arg5[%c0_4, %c0_5], %8 {strides = array<i32>} : memref<76x512xf32, #tpu.memory_space<vmem>>, vector<16x512xf32>,
    %c16 = arith.constant 16 : index
    %c0_6 = arith.constant 0 : index
    %10 = vector.load %arg5[%c16, %c0_6] : memref<76x512xf32, #tpu.memory_space<vmem>>, vector<48x512xf32>
    tpu.vector_store %arg5[%c16, %c0_6], %1 {strides = array<i32>} : memref<76x512xf32, #tpu.memory_space<vmem>>, vector<48x512xf32>,
    %c4 = arith.constant 4 : index
    %c0_7 = arith.constant 0 : index
    %11 = vector.load %arg5[%c4, %c0_7] : memref<76x512xf32, #tpu.memory_space<vmem>>, vector<72x512xf32>
    %12 = vector.extract_strided_slice %11 {offsets = [0, 0], sizes = [71, 512], strides = [1, 1]} : vector<72x512xf32> to vector<71x512xf32>
    %13 = vector.extract_strided_slice %11 {offsets = [1, 0], sizes = [71, 512], strides = [1, 1]} : vector<72x512xf32> to vector<71x512xf32>
    %14 = arith.addf %12, %13 : vector<71x512xf32>
    %15 = vector.extract_strided_slice %14 {offsets = [0, 0], sizes = [69, 512], strides = [1, 1]} : vector<71x512xf32> to vector<69x512xf32>
    %16 = vector.extract_strided_slice %14 {offsets = [2, 0], sizes = [69, 512], strides = [1, 1]} : vector<71x512xf32> to vector<69x512xf32>
    %17 = arith.addf %15, %16 : vector<69x512xf32>
    %18 = vector.extract_strided_slice %17 {offsets = [0, 0], sizes = [65, 512], strides = [1, 1]} : vector<69x512xf32> to vector<65x512xf32>
    %19 = vector.extract_strided_slice %17 {offsets = [4, 0], sizes = [65, 512], strides = [1, 1]} : vector<69x512xf32> to vector<65x512xf32>
    %20 = arith.addf %18, %19 : vector<65x512xf32>
    %21 = vector.extract_strided_slice %20 {offsets = [0, 0], sizes = [57, 512], strides = [1, 1]} : vector<65x512xf32> to vector<57x512xf32>
    %22 = vector.extract_strided_slice %20 {offsets = [8, 0], sizes = [57, 512], strides = [1, 1]} : vector<65x512xf32> to vector<57x512xf32>
    %23 = arith.addf %21, %22 : vector<57x512xf32>
    %24 = vector.extract_strided_slice %23 {offsets = [0, 0], sizes = [48, 512], strides = [1, 1]} : vector<57x512xf32> to vector<48x512xf32>
    %25 = vector.extract_strided_slice %20 {offsets = [16, 0], sizes = [48, 512], strides = [1, 1]} : vector<65x512xf32> to vector<48x512xf32>
    %26 = arith.addf %24, %25 : vector<48x512xf32>
    %27 = vector.extract_strided_slice %11 {offsets = [24, 0], sizes = [48, 512], strides = [1, 1]} : vector<72x512xf32> to vector<48x512xf32>
    %28 = arith.addf %26, %27 : vector<48x512xf32>
    %cst = arith.constant 4.000000e-02 : f32
    %29 = vector.broadcast %cst : f32 to vector<48x512xf32>
    %30 = arith.mulf %28, %29 : vector<48x512xf32>
    %c0_8 = arith.constant 0 : index
    %c0_9 = arith.constant 0 : index
    %c0_10 = arith.constant 0 : index
    %31 = vector.load %arg4[%c0_8, %c0_9, %c0_10] : memref<1x48x512xf32, #tpu.memory_space<vmem>>, vector<1x48x512xf32>
    %32 = vector.shape_cast %31 : vector<1x48x512xf32> to vector<48x512xf32>
    %33 = vector.shape_cast %30 : vector<48x512xf32> to vector<1x48x512xf32>
    tpu.vector_store %arg4[%c0_8, %c0_9, %c0_10], %33 {strides = array<i32>} : memref<1x48x512xf32, #tpu.memory_space<vmem>>, vector<1x48x512xf32>,
    %34 = arith.subf %1, %30 : vector<48x512xf32>
    %c0_11 = arith.constant 0 : index
    %c0_12 = arith.constant 0 : index
    %c0_13 = arith.constant 0 : index
    %35 = vector.load %arg3[%c0_11, %c0_12, %c0_13] : memref<1x48x512xf32, #tpu.memory_space<vmem>>, vector<1x48x512xf32>
    %36 = vector.shape_cast %35 : vector<1x48x512xf32> to vector<48x512xf32>
    %37 = vector.shape_cast %34 : vector<48x512xf32> to vector<1x48x512xf32>
    tpu.vector_store %arg3[%c0_11, %c0_12, %c0_13], %37 {strides = array<i32>} : memref<1x48x512xf32, #tpu.memory_space<vmem>>, vector<1x48x512xf32>,
    return
  }
  func.func @transform_0(%arg0: i32, %arg1: i32) -> (i32, i32, i32) {
    %c0_i32 = arith.constant 0 : i32
    %c0_i32_0 = arith.constant 0 : i32
    return %arg0, %c0_i32, %arg1 : i32, i32, i32
  }
  func.func @transform_1(%arg0: i32, %arg1: i32) -> (i32, i32, i32) {
    %c0_i32 = arith.constant 0 : i32
    %c0_i32_0 = arith.constant 0 : i32
    return %arg0, %c0_i32, %arg1 : i32, i32, i32
  }
  func.func @transform_2(%arg0: i32, %arg1: i32) -> (i32, i32, i32) {
    %c0_i32 = arith.constant 0 : i32
    %c0_i32_0 = arith.constant 0 : i32
    return %arg0, %c0_i32, %arg1 : i32, i32, i32
  }
}

</mosaic_0001>

<bundles_post_ra>
// kernel: series_decomp.1
= control target key start
LH: loop header
LB: loop body
LE: loop exit
PB: predicated region body
PF: predicated region fallthrough
CT: control target
= control target key end

     0   :  { %8 = vsyncpa [#allocation4], 0  ;;  %s2891_s0 = inlined_call_operand.hbm [shape: f32[2,48,1024], index: 0, kind: input, shape index: {}]   ;;  %s2892_s1 = inlined_call_operand.hbm [shape: f32[2,48,1024], index: 1, kind: output, shape index: {0}]   ;;  %s2893_s2 = inlined_call_operand.hbm [shape: f32[2,48,1024], index: 2, kind: output, shape index: {1}]  }
   0x1   :  { %10 = vsyncpa [#allocation4 + $0x1], 0 }
   0x2   :  { %11 = vsyncpa [#allocation5], 0 }
   0x3   :  { %13 = vsyncpa [#allocation5 + $0x1], 0 }
   0x4   :  { %14 = vsyncpa [#allocation8], 0 }
   0x5   :  { %16 = vsyncpa [#allocation8 + $0x1], 0  ;;  %s1693_s9 = smov 0   ;;  %s1695_s10 = smov 0  }
   0x6   :  { %s1697_s11 = smov 0   ;;  %s1699_s12 = smov 0  }
   0x7   :  { %s1701_s13 = smov 0   ;;  %s1703_s14 = smov 0  }
   0x8   :  { %s1705_s15 = smov 0   ;;  %s1707_s16 = smov 0  }
   0x9 LB: > { %s1387_s17 = sadd.s32 4294967295, %s1667_s16   ;;  %s1388_s18 = sadd.s32 4294967294, %s1667_s16   ;;  %s1667_s16 = sphi %s1707_s16, %s22_s16   ;;  %s1663_s15 = sphi %s1705_s15, %s2999_s15   ;;  %s1659_s14 = sphi %s1703_s14, %s2998_s14   ;;  %s1655_s13 = sphi %s1701_s13, %s2997_s13   ;;  %s1651_s12 = sphi %s1699_s12, %s2996_s12   ;;  %s1647_s11 = sphi %s1697_s11, %s2995_s11   ;;  %s1643_s10 = sphi %s1695_s10, %s2994_s10   ;;  %s1639_s9 = sphi %s1693_s9, %s2993_s9  }
   0xa   : > { %s31_s19 = sadd.s32 1, %s1659_s14  ;;  %s34_s20 = sadd.s32 1, %s1663_s15 }
   0xb   : > { %p32_p0 = scmp.ge.s32.totalorder %s31_s19, 2  ;;  %s43_s21 = sadd.s32 1, %s1647_s11 }
   0xc   : > { %p50_p1 = scmp.ne.s32.totalorder %s1647_s11, %s1643_s10  ;;  %p51_p2 = scmp.eq.s32.totalorder %s1667_s16, 0 }
   0xd   : > { %s3001_s19 = smov (%p32_p0, %s31_s19), 0  ;;  %s3003_s20 = smov (!%p32_p0, %s34_s20), %s1663_s15 }
   0xe   : > { %s39_s22 = ssub.s32 %s1659_s14, %s3001_s19  ;;  %p1746_p3 = por %p51_p2, %p50_p1 }
   0xf   : > { %p36_p4 = scmp.ge.s32.totalorder %s3003_s20, 2  ;;  %p56_p5 = scmp.ne.s32.totalorder %s1643_s10, %s1639_s9 }
  0x10   : > { %p57_p6 = scmp.eq.s32.totalorder %s1387_s17, 0  ;;  %p82_p7 = scmp.eq.s32.totalorder %s1387_s17, 3 }
  0x11   : > { %s3005_s20 = smov (%p36_p4, %s3003_s20), 0  ;;  %p88_p10 = scmp.eq.s32.totalorder %s1388_s18, 3 }
  0x12   : > { %p1754_p8 = por %p57_p6, %p56_p5  ;;  %p1758_p9 = por %p82_p7, %p50_p1 }
  0x13   : > { %s38_s26 = ssub.s32 %s1663_s15, %s3005_s20  ;;  %p1764_p12 = por %p88_p10, %p56_p5 }
  0x14   : > { %s2932_s25 = scalar_select %p1758_p9, 1, 0 }
  0x15   : > { %s40_s27 = sor.u32 %s39_s22, %s38_s26  ;;  %p1422_p13 = scmp.lt.s32.totalorder %s1667_s16, 4 }
  0x16   : > { %p41_p11 = scmp.eq.s32.totalorder %s40_s27, 0  ;;  %s136_s29 = sand.u32 1, %s1647_s11  }
  0x17   : > { %s2933_s28 = scalar_select %p1764_p12, 1, 0 }
  0x18   : > { %s1771_s30 = scalar_select %p41_p11, %s1647_s11, %s43_s21  }
  0x19   : > { %s1400_s3 = smul.u32 192, %s136_s29  ;;  %s1391_s4 = sshll.u32 %s1659_s14, 2 }
  0x1a   : > { %s1401_s5 = smul.u32 48, %s1663_s15  ;;  %p1777_p0 = pnand %p1422_p13, %p1746_p3 }
  0x1b   : > { %s140_s8 = scalar_lea.vmem [#allocation3], %s1400_s3  ;;  %s1789_s23 = scalar_lea.sflag [#allocation4], %s136_s29 }
  0x1c   : > { %s146_s7 = sadd.s32 %s1401_s5, %s1391_s4  ;;  %s149_s17 = sshll.u32 %s140_s8, 4  ;;  %s1781_s17 = int_to_ptr.vmem [resolvable:$true] %s149_s17 }
  0x1d   : > { %s1392_s18 = sshll.u32 %s146_s7, 7  ;;  %p1509_p3 = pneg %p1777_p0 }
  0x1e   : > { %s1786_s21 = scalar_lea.hbm %s2891_s0, %s1392_s18  ;;  %s1512_s5 = scalar_lea.hbm %s2891_s0, 12288 }
  0x1f   : > { %s1507_s27 = scalar_lea.hbm %s1786_s21, 3072  ;;  %p1513_p6 = scmp.lt.u32.totalorder %s1786_s21, %s2891_s0 }
  0x20   : > { %p1508_p2 = scmp.ne.s32.totalorder %s1786_s21, %s1507_s27  ;;  %p1514_p7 = scmp.lt.u32.totalorder %s1512_s5, %s1507_s27 }
  0x21   : > { %p1516_p11 = scmp.lt.u32.totalorder %s1507_s27, %s1786_s21 }
  0x22   : > { %p1510_p4 = pnand %p1509_p3, %p1508_p2  ;;  %p1515_p10 = por %p1514_p7, %p1513_p6 }
  0x24   : > { %p1511_p5 = pneg %p1510_p4  ;;  %p1517_p13 = por %p1516_p11, %p1515_p10 }
  0x26   : > { %p1518_p1 = pnand %p1517_p13, %p1511_p5 }
  0x28   : > { %1521 = shalt.err (!%p1518_p1)
}
  0x29   : > { %s1522_s29 = scalar_lea.vmem %s1781_s17, 3072  ;;  %s1669_s18 = smov [#allocation3]  }
  0x2a   : > { %p1523_p2 = scmp.ne.s32.totalorder %s1781_s17, %s1522_s29  ;;  %s1527_s22 = sshll.u32 %s1669_s18, 4  ;;  %s1528_s22 = int_to_ptr.vmem [resolvable:$false] %s1527_s22 }
  0x2b   : > { %s1529_s26 = scalar_lea.vmem %s1528_s22, 6144  ;;  %p1530_p9 = scmp.lt.s32.totalorder %s1781_s17, %s1528_s22 }
  0x2c   : > { %p1525_p4 = pnand %p1523_p2, %p1509_p3  ;;  %p1531_p6 = scmp.lt.s32.totalorder %s1529_s26, %s1522_s29 }
  0x2e   : > { %p1526_p12 = pneg %p1525_p4  ;;  %p1532_p7 = por %p1531_p6, %p1530_p9 }
  0x30   : > { %p1533_p10 = pnand %p1532_p7, %p1526_p12 }
  0x32   : > { %1536 = shalt.err (!%p1533_p10)
}
  0x33   : > { %s1670_s27 = smov 1024   ;;  %s1671_s3 = smov 512  }
  0x34   : > { %s1672_s4 = smov 32   ;;  %p157_p1 = scmp.lt.s32.totalorder %s1667_s16, 5 }
  0x35   : > { %1414 = dma.hbm_to_vmem [thread:$0]  (!%p1777_p0), %s1786_s21, 3072, %s1781_s17, %s1789_s23, %s1670_s27, %s1671_s3, %s1672_s4  }
  0x36   : > { %p2935_p3 = scmp.ge.s32.totalorder %s1667_s16, 1 }
  0x38   : > { %p158_p5 = pnand %p2935_p3, %p157_p1 }
  0x3a   : > { %161 = sbr.rel (%p158_p5) target bundleno = 263 (0x107), region = 24 }
  0x41   : > { %s1821_s5 = sand.u32 1, %s1643_s10  }
  0x42   : > { %s1824_s7 = smul.u32 192, %s1821_s5  ;;  %s164_s8 = scalar_lea.sflag [#allocation4], %s1821_s5 }
  0x44   : > { %s1828_s29 = scalar_lea.vmem [#allocation3], %s1824_s7 }
  0x45   : > { %1626 = dma.done.wait (%p1754_p8), %s164_s8, 3072  }
  0x46   : > { %1628 = vsyncadd (%p1754_p8), %s164_s8, 4294964224  ;;  %v220_v0 = vlaneseq  ;;  %v1835_v4 = vld [vmem:[%s1828_s29 + $0xa0] sm:$0xff]  ;;  %v1838_v5 = vld [vmem:[%s1828_s29 + $0xa8] sm:$0xff]  ;;  %vm404_vm0 = vcmask 1046528   ;;  %vm601_vm1 = vcmask 1045504   ;;  %vm794_vm2 = vcmask 1043456  }
  0x47   : > { %2936 = vst [vmem:[#allocation12_spill] sm:$0xff] %v1835_v4  ;;  %v1841_v6 = vld [vmem:[%s1828_s29 + $0xb0] sm:$0xff]  ;;  %320 = vst [vmem:[#allocation2 + $0xe0] sm:$0xff] %v1835_v4  ;;  %v1855_v10 = vld [vmem:[%s1828_s29 + $0xb8] sm:$0xff]  ;;  %v457_v11 = vrot.slane %v1835_v4, 1  ;;  %v2897_v15 = vrot.slane %v1838_v5, 1 }
  0x48   : > { %v221_v1 = vshrl.u32 %v220_v0, 7  ;;  %321 = vst [vmem:[#allocation2 + $0xe8] sm:$0xff] %v1838_v5  ;;  %322 = vst [vmem:[#allocation2 + $0xf0] sm:$0xff] %v1841_v6  ;;  %v1860_v12 = vld [vmem:[%s1828_s29] sm:$0xff]  ;;  %v1863_v13 = vld [vmem:[%s1828_s29 + $0x8] sm:$0xff]  ;;  %s2094_s24 = scalar_lea.vmem [#allocation7], %s1824_s7 }
  0x49   : > { %323 = vst [vmem:[#allocation2 + $0xf8] sm:$0xff] %v1855_v10  ;;  %v1873_v18 = vld [vmem:[%s1828_s29 + $0x10] sm:$0xff]  ;;  %v1876_v19 = vld [vmem:[%s1828_s29 + $0x18] sm:$0xff]  ;;  %v1879_v20 = vld [vmem:[%s1828_s29 + $0x20] sm:$0xff]  ;;  %v417_v39 = vrot.slane %v1860_v12, 1  ;;  %v419_v55 = vrot.slane %v1863_v13, 1 }
  0x4a   : > { %v222_v2 = vsub.s32 7, %v221_v1  ;;  %v278_v3 = vsub.s32 0, %v221_v1  ;;  %v1894_v25 = vld [vmem:[%s1828_s29 + $0x28] sm:$0xff]  ;;  %v1897_v26 = vld [vmem:[%s1828_s29 + $0x30] sm:$0xff]  ;;  %v1900_v27 = vld [vmem:[%s1828_s29 + $0x38] sm:$0xff]  ;;  %v425_v40 = vrot.slane %v1879_v20, 1 }
  0x4b   : > { %v1915_v32 = vld [vmem:[%s1828_s29 + $0x40] sm:$0xff]  ;;  %v1918_v33 = vld [vmem:[%s1828_s29 + $0x48] sm:$0xff]  ;;  %v1921_v34 = vld [vmem:[%s1828_s29 + $0x50] sm:$0xff]  ;;  %s2113_s6 = scalar_lea.vmem [#allocation6], %s1824_s7  ;;  %s1403_s17 = smul.u32 48, %s1655_s13 }
  0x4c   : > { %v1844_v7 = vrot.slane %v1835_v4, %v222_v2  ;;  %v1847_v8 = vrot.slane %v1838_v5, %v222_v2  ;;  %v1851_v9 = vrot.slane %v1841_v6, %v222_v2  ;;  %v1866_v14 = vrot.slane %v1855_v10, %v222_v2  ;;  %2939 = vst [vmem:[#allocation15_spill] sm:$0xff] %v1915_v32  ;;  %v1925_v35 = vld [vmem:[%s1828_s29 + $0x58] sm:$0xff]  ;;  %v1928_v36 = vld [vmem:[%s1828_s29 + $0x60] sm:$0xff]  ;;  %v1931_v37 = vld [vmem:[%s1828_s29 + $0x68] sm:$0xff]  ;;  %s1394_s21 = sshll.u32 %s1651_s12, 2  ;;  %s1244_s13 = sshll.u32 %s2113_s6, 4  ;;  %s2806_s13 = int_to_ptr.vmem [resolvable:$true] %s1244_s13 }
  0x4d   : > { %v1891_v24 = vrot.slane %v1860_v12, %v278_v3  ;;  %v1906_v29 = vrot.slane %v1863_v13, %v278_v3  ;;  %v1909_v30 = vrot.slane %v1873_v18, %v278_v3  ;;  %v1912_v31 = vrot.slane %v1876_v19, %v278_v3  ;;  %2940 = vst [vmem:[#allocation16_spill] sm:$0xff] %v1918_v33  ;;  %v1945_v42 = vld [vmem:[%s1828_s29 + $0x70] sm:$0xff]  ;;  %v1948_v43 = vld [vmem:[%s1828_s29 + $0x78] sm:$0xff]  ;;  %v1951_v44 = vld [vmem:[%s1828_s29 + $0x80] sm:$0xff]  ;;  %s2776_s12 = sadd.s32 %s1403_s17, %s1394_s21  ;;  %s1262_s18 = sshll.u32 %s2094_s24, 4  ;;  %s2795_s18 = int_to_ptr.vmem [resolvable:$true] %s1262_s18 }
  0x4e   : > { %2937 = vst [vmem:[#allocation13_spill] sm:$0xff] %v1844_v7  ;;  %2938 = vst [vmem:[#allocation14_spill] sm:$0xff] %v1847_v8  ;;  %v2896_v21 = vrot.slane %v1844_v7, 1  ;;  %v2895_v22 = vrot.slane %v1847_v8, 1  ;;  %v433_v45 = vrot.slane %v1915_v32, 1  ;;  %v441_v46 = vrot.slane %v1928_v36, 1 }
  0x4f   : > { %268 = vst [vmem:[#allocation2 + $0x100] sm:$0xff] %v1844_v7  ;;  %272 = vst [vmem:[#allocation2 + $0x120] sm:$0xf] %v1844_v7  ;;  %v406_v38 = vrot.slane %v1891_v24, 1  ;;  %v409_v47 = vrot.slane %v1906_v29, 1  ;;  %v1960_v49 = vld [vmem:[%s1828_s29 + $0x88] sm:$0xff]  ;;  %v426_v53 = vsel %vm404_vm0, %v417_v39, %v425_v40 }
  0x50   : > { %269 = vst [vmem:[#allocation2 + $0x108] sm:$0xff] %v1847_v8  ;;  %273 = vst [vmem:[#allocation2 + $0x128] sm:$0xf] %v1847_v8  ;;  %v466_v41 = vsel %vm404_vm0, %v457_v11, %v2896_v21  ;;  %v1963_v50 = vld [vmem:[%s1828_s29 + $0x90] sm:$0xff]  ;;  %v1966_v51 = vld [vmem:[%s1828_s29 + $0x98] sm:$0xff]  ;;  %v449_v54 = vrot.slane %v1951_v44, 1  ;;  %v434_v56 = vsel %vm404_vm0, %v425_v40, %v433_v45  ;;  %v442_v57 = vsel %vm404_vm0, %v433_v45, %v441_v46 }
  0x51   : > { %270 = vst [vmem:[#allocation2 + $0x110] sm:$0xff] %v1851_v9  ;;  %274 = vst [vmem:[#allocation2 + $0x130] sm:$0xf] %v1851_v9  ;;  %v1957_v48 = vadd.f32 %v466_v41, %v1835_v4  ;;  %v418_v52 = vsel %vm404_vm0, %v406_v38, %v417_v39  ;;  %v529_v59 = vadd.f32 %v426_v53, %v1860_v12  ;;  %v427_v21 = vrot.slane %v1894_v25, 1  ;;  %s1395_s23 = sshll.u32 %s2776_s12, 7  ;;  %s1229_s8 = scalar_lea.sflag [#allocation8], %s1821_s5 }
  0x52   : > { %271 = vst [vmem:[#allocation2 + $0x118] sm:$0xff] %v1866_v14  ;;  %275 = vst [vmem:[#allocation2 + $0x138] sm:$0xf] %v1866_v14  ;;  %v525_v58 = vadd.f32 %v418_v52, %v1891_v24  ;;  %v450_v60 = vsel %vm404_vm0, %v441_v46, %v449_v54  ;;  %v533_v61 = vadd.f32 %v434_v56, %v1879_v20  ;;  %v435_v28 = vrot.slane %v1918_v33, 1  ;;  %s2793_s27 = scalar_lea.hbm %s2893_s2, %s1395_s23  ;;  %s2804_s7 = scalar_lea.hbm %s2892_s1, %s1395_s23 }
  0x53   : > { %2941 = vst [vmem:[#allocation17_spill] sm:$0xff] %v1921_v34  ;;  %292 = vst [vmem:[#allocation2] sm:$0xff] %v1891_v24  ;;  %v537_v62 = vadd.f32 %v442_v57, %v1915_v32  ;;  %v420_v63 = vsel %vm404_vm0, %v409_v47, %v419_v55  ;;  %v1989_v3 = vadd.f32 %v450_v60, %v1928_v36  ;;  %s1537_s29 = scalar_lea.vmem %s2795_s18, 3072  ;;  %p2991_p9 = scmp.ne.s32.totalorder %s2932_s25, 0 }
  0x54   : > { %293 = vst [vmem:[#allocation2 + $0x8] sm:$0xff] %v1906_v29  ;;  %294 = vst [vmem:[#allocation2 + $0x10] sm:$0xff] %v1909_v30  ;;  %v1992_v24 = vadd.f32 %v420_v63, %v1906_v29  ;;  %v1997_v39 = vsel %vm404_vm0, %v449_v54, %v457_v11  ;;  %v2004_v40 = vsel %vm404_vm0, %v2897_v15, %v2895_v22  ;;  %v603_v52 = vrot.slane %v525_v58, 2  ;;  %p1538_p8 = scmp.ne.s32.totalorder %s2795_s18, %s1537_s29  ;;  %s1673_s17 = smov [#allocation7]  }
  0x55   : > { %295 = vst [vmem:[#allocation2 + $0x18] sm:$0xff] %v1912_v31  ;;  %318 = vst [vmem:[#allocation2 + $0xd0] sm:$0xff] %v1963_v50  ;;  %v614_v54 = vrot.slane %v529_v59, 2  ;;  %v622_v56 = vrot.slane %v533_v61, 2  ;;  %v630_v57 = vrot.slane %v537_v62, 2  ;;  %v2917_v63 = vrot.slane %v1989_v3, 2 }
  0x56   : > { %319 = vst [vmem:[#allocation2 + $0xd8] sm:$0xff] %v1966_v51  ;;  %v1982_v0 = vld [vmem:[#allocation2 + $0x120] sm:$0xf]  ;;  %p1539_p12 = pnand %p1538_p8, %p2991_p9  ;;  %s1541_s21 = sshll.u32 %s1673_s17, 4  ;;  %s1542_s21 = int_to_ptr.vmem [resolvable:$false] %s1541_s21 }
  0x57   : > { %2942 = vst [vmem:[#allocation18_spill] sm:$0xff] %v1982_v0  ;;  %v1984_v1 = vld [vmem:[#allocation2 + $0x128] sm:$0xf]  ;;  %v615_v45 = vsel %vm601_vm1, %v603_v52, %v614_v54  ;;  %v623_v46 = vsel %vm601_vm1, %v614_v54, %v622_v56  ;;  %v631_v29 = vsel %vm601_vm1, %v622_v56, %v630_v57  ;;  %v639_v17 = vsel %vm601_vm1, %v630_v57, %v2917_v63  ;;  %s1543_s12 = scalar_lea.vmem %s1542_s21, 6144  ;;  %p1544_p11 = scmp.lt.s32.totalorder %s2795_s18, %s1542_s21 }
  0x58   : > { %2943 = vst [vmem:[#allocation19_spill] sm:$0xff] %v1984_v1  ;;  %v1986_v2 = vld [vmem:[#allocation2 + $0x130] sm:$0xf]  ;;  %v722_v16 = vadd.f32 %v615_v45, %v525_v58  ;;  %v726_v15 = vadd.f32 %v623_v46, %v529_v59  ;;  %v428_v54 = vsel %vm404_vm0, %v419_v55, %v427_v21  ;;  %v436_v56 = vsel %vm404_vm0, %v427_v21, %v435_v28  ;;  %p1540_p0 = pneg %p1539_p12  ;;  %p1545_p13 = scmp.lt.s32.totalorder %s1543_s12, %s1537_s29 }
  0x59   : > { %2944 = vst [vmem:[#allocation20_spill] sm:$0xff] %v1986_v2  ;;  %v2006_v41 = vld [vmem:[#allocation2 + $0x138] sm:$0xf]  ;;  %v2022_v2 = vadd.f32 %v639_v17, %v537_v62  ;;  %v443_v57 = vrot.slane %v1931_v37, 1  ;;  %v2916_v59 = vrot.slane %v1960_v49, 1 }
  0x5a   : > { %2945 = vst [vmem:[#allocation21_spill] sm:$0xff] %v2006_v41  ;;  %v324_v11 = vld [vmem:[#allocation2] sm:$0xf0]  ;;  %v730_v41 = vadd.f32 %v631_v29, %v533_v61  ;;  %v795_v1 = vrot.slane %v722_v16, 4  ;;  %v799_v7 = vrot.slane %v726_v15, 4  ;;  %v530_v61 = vadd.f32 %v428_v54, %v1863_v13  ;;  %p1546_p2 = por %p1545_p13, %p1544_p11 }
  0x5b   : > { %v405_v60 = vrot.slane %v324_v11, 1  ;;  %v325_v22 = vld [vmem:[#allocation2 + $0x8] sm:$0xf0]  ;;  %v444_v29 = vsel %vm404_vm0, %v435_v28, %v443_v57 }
  0x5c   : > { %v408_v23 = vrot.slane %v325_v22, 1  ;;  %v800_v58 = vsel %vm794_vm2, %v795_v1, %v799_v7  ;;  %p1547_p4 = pnand %p1546_p2, %p1540_p0 }
  0x5d   : > { %v407_v53 = vsel %vm404_vm0, %v405_v60, %v406_v38  ;;  %v807_v38 = vrot.slane %v730_v41, 4  ;;  %v2911_v60 = vrot.slane %v2022_v2, 4  ;;  %v903_v55 = vadd.f32 %v800_v58, %v722_v16 }
  0x5e   : > { %v521_v4 = vadd.f32 %v407_v53, %v324_v11  ;;  %v410_v8 = vsel %vm404_vm0, %v408_v23, %v409_v47  ;;  %v326_v53 = vld [vmem:[#allocation2 + $0x10] sm:$0xf0] }
  0x5f   : > { %v522_v17 = vadd.f32 %v410_v8, %v325_v22  ;;  %v808_v47 = vsel %vm794_vm2, %v799_v7, %v807_v38  ;;  %v816_v21 = vsel %vm794_vm2, %v807_v38, %v2911_v60  ;;  %v452_v8 = vsel %vm404_vm0, %v443_v57, %v2916_v59 }
  0x60   : > { %v602_v0 = vrot.slane %v521_v4, 2  ;;  %v2037_v45 = vadd.f32 %v808_v47, %v726_v15  ;;  %v2039_v46 = vadd.f32 %v816_v21, %v730_v41  ;;  %v534_v22 = vadd.f32 %v436_v56, %v1894_v25 }
  0x61   : > { %v538_v7 = vadd.f32 %v444_v29, %v1918_v33  ;;  %v606_v15 = vrot.slane %v1992_v24, 2  ;;  %v616_v41 = vrot.slane %v530_v61, 2  ;;  %v411_v54 = vrot.slane %v326_v53, 1 }
  0x62   : > { %v604_v23 = vsel %vm601_vm1, %v602_v0, %v603_v52  ;;  %v605_v0 = vrot.slane %v522_v17, 2  ;;  %v939_v16 = vadd.f32 %v2037_v45, %v903_v55  ;;  %v624_v28 = vrot.slane %v534_v22, 2 }
  0x63   : > { %v718_v62 = vadd.f32 %v604_v23, %v521_v4  ;;  %v2049_v4 = vadd.f32 %v452_v8, %v1931_v37  ;;  %v632_v11 = vrot.slane %v538_v7, 2 }
  0x64   : > { %v967_v57 = vadd.f32 %v939_v16, %v2039_v46  ;;  %v607_v56 = vsel %vm601_vm1, %v605_v0, %v606_v15  ;;  %v625_v23 = vsel %vm601_vm1, %v616_v41, %v624_v28 }
  0x65   : > { %v899_v52 = vadd.f32 %v795_v1, %v718_v62  ;;  %v2914_v58 = vrot.slane %v2049_v4, 2  ;;  %v617_v1 = vsel %vm601_vm1, %v606_v15, %v616_v41  ;;  %v633_v47 = vsel %vm601_vm1, %v624_v28, %v632_v11 }
  0x66   : > { %v719_v21 = vadd.f32 %v607_v56, %v522_v17  ;;  %v995_v29 = vadd.f32 %v967_v57, %v1915_v32  ;;  %v723_v8 = vadd.f32 %v617_v1, %v1992_v24  ;;  %v727_v0 = vadd.f32 %v625_v23, %v530_v61 }
  0x67   : > { %v935_v38 = vadd.f32 %v903_v55, %v899_v52  ;;  %v641_v55 = vsel %vm601_vm1, %v632_v11, %v2914_v58  ;;  %v731_v52 = vadd.f32 %v633_v47, %v534_v22  ;;  %v412_v15 = vrot.slane %v1909_v30, 1 }
  0x68   : > { %v2064_v16 = vadd.f32 %v641_v55, %v538_v7  ;;  %v2068_v28 = vmul.f32 0.04, %v995_v29  ;;  %v796_v17 = vrot.slane %v723_v8, 4  ;;  %v801_v57 = vrot.slane %v727_v0, 4 }
  0x69   : > { %v963_v62 = vadd.f32 %v935_v38, %v2037_v45  ;;  %v421_v38 = vrot.slane %v1873_v18, 1  ;;  %v809_v56 = vrot.slane %v731_v52, 4  ;;  %v413_v11 = vsel %vm404_vm0, %v411_v54, %v412_v15 }
  0x6a   : > { %v2912_v60 = vrot.slane %v2064_v16, 4  ;;  %v2913_v61 = vrot.slane %v2068_v28, 4  ;;  %v900_v22 = vadd.f32 %v796_v17, %v719_v21  ;;  %v802_v1 = vsel %vm794_vm2, %v796_v17, %v801_v57 }
  0x6b   : > { %v991_v41 = vadd.f32 %v963_v62, %v1879_v20  ;;  %v422_v7 = vsel %vm404_vm0, %v412_v15, %v421_v38  ;;  %v810_v23 = vsel %vm794_vm2, %v801_v57, %v809_v56  ;;  %v429_v62 = vrot.slane %v1897_v26, 1 }
  0x6c   : > { %v818_v47 = vsel %vm794_vm2, %v809_v56, %v2912_v60  ;;  %v904_v55 = vadd.f32 %v802_v1, %v723_v8  ;;  %v2081_v54 = vadd.f32 %v810_v23, %v727_v0  ;;  %v437_v15 = vrot.slane %v1921_v34, 1 }
  0x6d   : > { %v1019_v24 = vmul.f32 0.04, %v991_v41  ;;  %v2083_v41 = vadd.f32 %v818_v47, %v731_v52  ;;  %v430_v21 = vsel %vm404_vm0, %v421_v38, %v429_v62  ;;  %v445_v17 = vrot.slane %v1945_v42, 1  ;;  %v327_v47 = vld [vmem:[#allocation2 + $0x18] sm:$0xf0] }
  0x6e   : > { %v2915_v57 = vrot.slane %v1963_v50, 1  ;;  %v936_v60 = vadd.f32 %v904_v55, %v900_v22  ;;  %v523_v8 = vadd.f32 %v413_v11, %v326_v53  ;;  %v438_v52 = vsel %vm404_vm0, %v429_v62, %v437_v15 }
  0x6f   : > { %v1075_v29 = vrot.slane %v1019_v24, 4  ;;  %v940_v24 = vadd.f32 %v2081_v54, %v904_v55  ;;  %v446_v38 = vsel %vm404_vm0, %v437_v15, %v445_v17  ;;  %v527_v53 = vadd.f32 %v422_v7, %v1909_v30 }
  0x70   : > { %v454_v1 = vsel %vm404_vm0, %v445_v17, %v2915_v57  ;;  %v964_v22 = vadd.f32 %v936_v60, %v2081_v54  ;;  %v531_v11 = vadd.f32 %v430_v21, %v1873_v18  ;;  %v608_v55 = vrot.slane %v523_v8, 2 }
  0x71   : > { %v1077_v56 = vsel %vm794_vm2, %v1075_v29, %v2913_v61  ;;  %v968_v23 = vadd.f32 %v940_v24, %v2083_v41  ;;  %v535_v29 = vadd.f32 %v438_v52, %v1897_v26  ;;  %v2110_v62 = vadd.f32 %v454_v1, %v1945_v42 }
  0x72   : > { %1151 = vst [vmem:[%s2094_s24] sm:$0xff] %v1077_v56  ;;  %v1175_v0 = vsub.f32 %v1860_v12, %v1077_v56  ;;  %v539_v12 = vadd.f32 %v446_v38, %v1921_v34  ;;  %v992_v60 = vadd.f32 %v964_v22, %v1894_v25  ;;  %v609_v30 = vrot.slane %v527_v53, 2 }
  0x73   : > { %v996_v15 = vadd.f32 %v968_v23, %v1918_v33  ;;  %v618_v7 = vrot.slane %v531_v11, 2  ;;  %v626_v21 = vrot.slane %v535_v29, 2  ;;  %v2921_v56 = vrot.slane %v2110_v62, 2 }
  0x74   : > { %1199 = vst [vmem:[%s2113_s6] sm:$0xff] %v1175_v0  ;;  %v634_v17 = vrot.slane %v539_v12, 2  ;;  %v414_v24 = vrot.slane %v327_v47, 1  ;;  %v1020_v52 = vmul.f32 0.04, %v992_v60  ;;  %v610_v1 = vsel %vm601_vm1, %v608_v55, %v609_v30 }
  0x75   : > { %v2119_v38 = vmul.f32 0.04, %v996_v15  ;;  %v619_v61 = vsel %vm601_vm1, %v609_v30, %v618_v7  ;;  %v627_v0 = vsel %vm601_vm1, %v618_v7, %v626_v21  ;;  %v720_v58 = vadd.f32 %v610_v1, %v523_v8 }
  0x76   : > { %v635_v22 = vsel %vm601_vm1, %v626_v21, %v634_v17  ;;  %v643_v23 = vsel %vm601_vm1, %v634_v17, %v2921_v56  ;;  %v1078_v57 = vrot.slane %v1020_v52, 4  ;;  %v724_v60 = vadd.f32 %v619_v61, %v527_v53 }
  0x77   : > { %v2919_v59 = vrot.slane %v2119_v38, 4  ;;  %v728_v15 = vadd.f32 %v627_v0, %v531_v11  ;;  %v732_v63 = vadd.f32 %v635_v22, %v535_v29  ;;  %v2129_v33 = vadd.f32 %v643_v23, %v539_v12 }
  0x78   : > { %v415_v55 = vrot.slane %v1912_v31, 1  ;;  %v423_v30 = vrot.slane %v1876_v19, 1  ;;  %v797_v21 = vrot.slane %v724_v60, 4  ;;  %v431_v8 = vrot.slane %v1900_v27, 1 }
  0x79   : > { %v1080_v7 = vsel %vm794_vm2, %v1078_v57, %v2919_v59  ;;  %v803_v17 = vrot.slane %v728_v15, 4  ;;  %v811_v53 = vrot.slane %v732_v63, 4  ;;  %v2920_v11 = vrot.slane %v2129_v33, 4 }
  0x7a   : > { %1152 = vst [vmem:[%s2094_s24 + $0x8] sm:$0xff] %v1080_v7  ;;  %v1176_v61 = vsub.f32 %v1863_v13, %v1080_v7  ;;  %v416_v29 = vsel %vm404_vm0, %v414_v24, %v415_v55  ;;  %v901_v52 = vadd.f32 %v797_v21, %v720_v58  ;;  %v424_v1 = vsel %vm404_vm0, %v415_v55, %v423_v30 }
  0x7b   : > { %v804_v12 = vsel %vm794_vm2, %v797_v21, %v803_v17  ;;  %v432_v57 = vsel %vm404_vm0, %v423_v30, %v431_v8  ;;  %v812_v0 = vsel %vm794_vm2, %v803_v17, %v811_v53  ;;  %v820_v22 = vsel %vm794_vm2, %v811_v53, %v2920_v11 }
  0x7c   : > { %v905_v23 = vadd.f32 %v804_v12, %v724_v60  ;;  %v439_v13 = vrot.slane %v1925_v35, 1  ;;  %1200 = vst [vmem:[%s2113_s6 + $0x8] sm:$0xff] %v1176_v61  ;;  %v2150_v7 = vadd.f32 %v812_v0, %v728_v15  ;;  %v2152_v24 = vadd.f32 %v820_v22, %v732_v63 }
  0x7d   : > { %v447_v58 = vrot.slane %v1948_v43, 1  ;;  %v2922_v55 = vrot.slane %v1966_v51, 1  ;;  %v524_v17 = vadd.f32 %v416_v29, %v327_v47  ;;  %v528_v59 = vadd.f32 %v424_v1, %v1912_v31 }
  0x7e   : > { %v937_v21 = vadd.f32 %v905_v23, %v901_v52  ;;  %v440_v30 = vsel %vm404_vm0, %v431_v8, %v439_v13  ;;  %v941_v53 = vadd.f32 %v2150_v7, %v905_v23  ;;  %v532_v63 = vadd.f32 %v432_v57, %v1876_v19 }
  0x7f   : > { %v448_v60 = vsel %vm404_vm0, %v439_v13, %v447_v58  ;;  %v456_v15 = vsel %vm404_vm0, %v447_v58, %v2922_v55  ;;  %v536_v12 = vadd.f32 %v440_v30, %v1900_v27  ;;  %v611_v8 = vrot.slane %v524_v17, 2 }
  0x80   : > { %v965_v61 = vadd.f32 %v937_v21, %v2150_v7  ;;  %v540_v52 = vadd.f32 %v448_v60, %v1925_v35  ;;  %v2168_v47 = vadd.f32 %v456_v15, %v1948_v43  ;;  %v969_v31 = vadd.f32 %v941_v53, %v2152_v24 }
  0x81   : > { %v612_v29 = vrot.slane %v528_v59, 2  ;;  %v620_v1 = vrot.slane %v532_v63, 2  ;;  %v628_v22 = vrot.slane %v536_v12, 2  ;;  %v2178_v30 = vadd.f32 %v1997_v39, %v1951_v44 }
  0x82   : > { %v993_v0 = vadd.f32 %v965_v61, %v1897_v26  ;;  %v636_v23 = vrot.slane %v540_v52, 2  ;;  %v644_v57 = vrot.slane %v2168_v47, 2  ;;  %v997_v13 = vadd.f32 %v969_v31, %v1921_v34 }
  0x83   : > { %v613_v58 = vsel %vm601_vm1, %v611_v8, %v612_v29  ;;  %v621_v21 = vsel %vm601_vm1, %v612_v29, %v620_v1  ;;  %v629_v60 = vsel %vm601_vm1, %v620_v1, %v628_v22  ;;  %v646_v39 = vrot.slane %v2178_v30, 2 }
  0x84   : > { %v1021_v53 = vmul.f32 0.04, %v993_v0  ;;  %v637_v15 = vsel %vm601_vm1, %v628_v22, %v636_v23  ;;  %v645_v61 = vsel %vm601_vm1, %v636_v23, %v644_v57  ;;  %v2185_v11 = vmul.f32 0.04, %v997_v13 }
  0x85   : > { %v721_v31 = vadd.f32 %v613_v58, %v524_v17  ;;  %v725_v56 = vadd.f32 %v621_v21, %v528_v59  ;;  %v729_v8 = vadd.f32 %v629_v60, %v532_v63  ;;  %v733_v29 = vadd.f32 %v637_v15, %v536_v12 }
  0x86   : > { %v1081_v55 = vrot.slane %v1021_v53, 4  ;;  %v2187_v34 = vadd.f32 %v645_v61, %v540_v52  ;;  %v2928_v1 = vrot.slane %v2185_v11, 4  ;;  %v943_v32 = vadd.f32 %v2039_v46, %v2037_v45 }
  0x87   : > { %v798_v0 = vrot.slane %v725_v56, 4  ;;  %v805_v22 = vrot.slane %v729_v8, 4  ;;  %v813_v23 = vrot.slane %v733_v29, 4  ;;  %v2946_v59 = vrot.slane %v1989_v3, 2 }
  0x88   : > { %v821_v13 = vrot.slane %v2187_v34, 4  ;;  %v2947_v63 = vrot.slane %v1838_v5, 1  ;;  %v2948_v12 = vrot.slane %v1960_v49, 1  ;;  %v1083_v58 = vsel %vm794_vm2, %v1081_v55, %v2928_v1 }
  0x89   : > { %v647_v17 = vsel %vm601_vm1, %v2946_v59, %v646_v39  ;;  %v806_v21 = vsel %vm794_vm2, %v798_v0, %v805_v22  ;;  %v902_v45 = vadd.f32 %v798_v0, %v721_v31  ;;  %1153 = vst [vmem:[%s2094_s24 + $0x10] sm:$0xff] %v1083_v58  ;;  %v1177_v60 = vsub.f32 %v1873_v18, %v1083_v58 }
  0x8a   : > { %v460_v52 = vsel %vm404_vm0, %v2948_v12, %v2947_v63  ;;  %v2207_v53 = vadd.f32 %v647_v17, %v1989_v3  ;;  %v814_v15 = vsel %vm794_vm2, %v805_v22, %v813_v23  ;;  %v822_v61 = vsel %vm794_vm2, %v813_v23, %v821_v13 }
  0x8b   : > { %v906_v59 = vadd.f32 %v806_v21, %v725_v56  ;;  %v910_v63 = vadd.f32 %v814_v15, %v729_v8  ;;  %v2215_v12 = vadd.f32 %v822_v61, %v733_v29  ;;  %v2219_v31 = vadd.f32 %v460_v52, %v1960_v49  ;;  %1201 = vst [vmem:[%s2113_s6 + $0x10] sm:$0xff] %v1177_v60 }
  0x8c   : > { %v823_v55 = vrot.slane %v2207_v53, 4  ;;  %v944_v0 = vadd.f32 %v2083_v41, %v2081_v54  ;;  %v2949_v18 = vrot.slane %v1841_v6, 1  ;;  %v2950_v22 = vrot.slane %v1963_v50, 1 }
  0x8d   : > { %v938_v3 = vadd.f32 %v906_v59, %v902_v45  ;;  %v945_v56 = vadd.f32 %v2152_v24, %v2150_v7  ;;  %v942_v8 = vadd.f32 %v910_v63, %v906_v59  ;;  %v2951_v29 = vrot.slane %v2022_v2, 4 }
  0x8e   : > { %v462_v17 = vsel %vm404_vm0, %v2950_v22, %v2949_v18  ;;  %v648_v52 = vrot.slane %v2219_v31, 2  ;;  %v2952_v45 = vrot.slane %v1855_v10, 1  ;;  %v2953_v7 = vrot.slane %v1966_v51, 1 }
  0x8f   : > { %v824_v23 = vsel %vm794_vm2, %v2951_v29, %v823_v55  ;;  %v2238_v54 = vadd.f32 %v462_v17, %v1963_v50  ;;  %v966_v58 = vadd.f32 %v938_v3, %v910_v63  ;;  %v946_v15 = vadd.f32 %v2215_v12, %v910_v63 }
  0x90   : > { %v2241_v21 = vadd.f32 %v824_v23, %v2022_v2  ;;  %v464_v60 = vsel %vm404_vm0, %v2953_v7, %v2952_v45  ;;  %v970_v61 = vadd.f32 %v942_v8, %v2215_v12  ;;  %v2954_v59 = vrot.slane %v2049_v4, 2 }
  0x91   : > { %v650_v22 = vrot.slane %v2238_v54, 2  ;;  %v2255_v3 = vadd.f32 %v464_v60, %v1966_v51  ;;  %v994_v2 = vadd.f32 %v966_v58, %v1900_v27  ;;  %v2926_v63 = vrot.slane %v1957_v48, 2 }
  0x92   : > { %v649_v18 = vsel %vm601_vm1, %v2954_v59, %v648_v52  ;;  %v971_v17 = vadd.f32 %v943_v32, %v2241_v21  ;;  %v998_v8 = vadd.f32 %v970_v61, %v1925_v35  ;;  %v2955_v23 = vrot.slane %v2110_v62, 2 }
  0x93   : > { %v2260_v29 = vadd.f32 %v649_v18, %v2049_v4  ;;  %v2925_v7 = vrot.slane %v2255_v3, 2  ;;  %v947_v58 = vadd.f32 %v2241_v21, %v2039_v46  ;;  %v1022_v60 = vmul.f32 0.04, %v994_v2 }
  0x94   : > { %v651_v45 = vsel %vm601_vm1, %v2955_v23, %v650_v22  ;;  %v999_v32 = vadd.f32 %v971_v17, %v1928_v36  ;;  %v2277_v61 = vmul.f32 0.04, %v998_v8  ;;  %v655_v46 = vsel %vm601_vm1, %v646_v39, %v2926_v63 }
  0x95   : > { %v825_v4 = vrot.slane %v2260_v29, 4  ;;  %v2275_v59 = vadd.f32 %v651_v45, %v2110_v62  ;;  %v653_v18 = vsel %vm601_vm1, %v644_v57, %v2925_v7  ;;  %v2289_v2 = vadd.f32 %v2004_v40, %v1838_v5 }
  0x96   : > { %v1084_v17 = vrot.slane %v1022_v60, 4  ;;  %v2291_v62 = vmul.f32 0.04, %v999_v32  ;;  %v2956_v8 = vrot.slane %v2064_v16, 4  ;;  %v1085_v57 = vrot.slane %v2277_v61, 4 }
  0x97   : > { %v2927_v45 = vrot.slane %v2275_v59, 4  ;;  %v2302_v39 = vadd.f32 %v653_v18, %v2168_v47  ;;  %v2305_v40 = vadd.f32 %v655_v46, %v2178_v30  ;;  %v2957_v32 = vrot.slane %v2129_v33, 4 }
  0x98   : > { %v826_v23 = vsel %vm794_vm2, %v2956_v8, %v825_v4  ;;  %v1087_v60 = vrot.slane %v2291_v62, 4  ;;  %v656_v63 = vrot.slane %v2289_v2, 2  ;;  %v1086_v30 = vsel %vm794_vm2, %v1084_v17, %v1085_v57 }
  0x99   : > { %v2299_v7 = vadd.f32 %v826_v23, %v2064_v16  ;;  %v828_v8 = vsel %vm794_vm2, %v2957_v32, %v2927_v45  ;;  %v2958_v16 = vrot.slane %v1851_v9, 1  ;;  %v2959_v23 = vrot.slane %v1841_v6, 1  ;;  %1154 = vst [vmem:[%s2094_s24 + $0x18] sm:$0xff] %v1086_v30 }
  0x9a   : > { %v2324_v46 = vadd.f32 %v828_v8, %v2129_v33  ;;  %v829_v32 = vrot.slane %v2302_v39, 4  ;;  %v1178_v45 = vsub.f32 %v1876_v19, %v1086_v30  ;;  %v2960_v1 = vrot.slane %v2068_v28, 4 }
  0x9b   : > { %v470_v47 = vsel %vm404_vm0, %v2959_v23, %v2958_v16  ;;  %v972_v18 = vadd.f32 %v944_v0, %v2299_v7  ;;  %v831_v23 = vrot.slane %v2305_v40, 4  ;;  %v657_v33 = vsel %vm601_vm1, %v648_v52, %v656_v63 }
  0x9c   : > { %v1088_v16 = vsel %vm794_vm2, %v2960_v1, %v1087_v60  ;;  %v973_v19 = vadd.f32 %v945_v56, %v2324_v46  ;;  %v830_v28 = vsel %vm794_vm2, %v821_v13, %v829_v32  ;;  %v948_v56 = vadd.f32 %v2299_v7, %v2083_v41  ;;  %1202 = vst [vmem:[%s2113_s6 + $0x18] sm:$0xff] %v1178_v45 }
  0x9d   : > { %1155 = vst [vmem:[%s2094_s24 + $0x20] sm:$0xff] %v1088_v16  ;;  %v1179_v0 = vsub.f32 %v1879_v20, %v1088_v16  ;;  %v1000_v17 = vadd.f32 %v972_v18, %v1931_v37  ;;  %v2348_v1 = vadd.f32 %v830_v28, %v2187_v34  ;;  %v832_v52 = vsel %vm794_vm2, %v823_v55, %v831_v23 }
  0x9e   : > { %v2356_v20 = vadd.f32 %v657_v33, %v2219_v31  ;;  %v1001_v13 = vadd.f32 %v973_v19, %v1945_v42  ;;  %v2365_v34 = vadd.f32 %v832_v52, %v2207_v53  ;;  %v2368_v30 = vadd.f32 %v470_v47, %v1841_v6 }
  0x9f   : > { %v2361_v8 = vmul.f32 0.04, %v1000_v17  ;;  %1203 = vst [vmem:[%s2113_s6 + $0x20] sm:$0xff] %v1179_v0  ;;  %v974_v55 = vadd.f32 %v946_v15, %v2348_v1  ;;  %v949_v41 = vadd.f32 %v2324_v46, %v2152_v24  ;;  %v2961_v45 = vrot.slane %v1866_v14, 1 }
  0xa0   : > { %v833_v31 = vrot.slane %v2356_v20, 4  ;;  %v2962_v18 = vrot.slane %v1855_v10, 1  ;;  %v2381_v33 = vmul.f32 0.04, %v1001_v13  ;;  %v975_v47 = vadd.f32 %v947_v58, %v2365_v34 }
  0xa1   : > { %v1089_v53 = vrot.slane %v2361_v8, 4  ;;  %v658_v15 = vrot.slane %v2368_v30, 2  ;;  %v1002_v0 = vadd.f32 %v974_v55, %v1948_v43  ;;  %v950_v19 = vadd.f32 %v2348_v1, %v2215_v12 }
  0xa2   : > { %v472_v16 = vsel %vm404_vm0, %v2962_v18, %v2961_v45  ;;  %v834_v24 = vsel %vm794_vm2, %v825_v4, %v833_v31  ;;  %v2963_v28 = vrot.slane %v2119_v38, 4  ;;  %v1091_v58 = vrot.slane %v2381_v33, 4 }
  0xa3   : > { %v2390_v17 = vadd.f32 %v472_v16, %v1855_v10  ;;  %v1003_v8 = vadd.f32 %v975_v47, %v1951_v44  ;;  %v2400_v13 = vadd.f32 %v834_v24, %v2260_v29  ;;  %v2404_v10 = vmul.f32 0.04, %v1002_v0  ;;  %v2966_v0 = vld [vmem:[#allocation18_spill] sm:$0xff] }
  0xa4   : > { %v1090_v52 = vsel %vm794_vm2, %v2963_v28, %v1089_v53  ;;  %v659_v38 = vsel %vm601_vm1, %v650_v22, %v658_v15  ;;  %v2964_v55 = vrot.slane %v2185_v11, 4  ;;  %v2965_v11 = vrot.slane %v2255_v3, 2  ;;  %v2968_v28 = vld [vmem:[#allocation13_spill] sm:$0xff] }
  0xa5   : > { %1156 = vst [vmem:[%s2094_s24 + $0x28] sm:$0xff] %v1090_v52  ;;  %v1180_v4 = vsub.f32 %v1894_v25, %v1090_v52  ;;  %v2929_v12 = vrot.slane %v2390_v17, 2  ;;  %v2417_v45 = vmul.f32 0.04, %v1003_v8  ;;  %v976_v25 = vadd.f32 %v948_v56, %v2400_v13 }
  0xa6   : > { %v1092_v29 = vsel %vm794_vm2, %v2964_v55, %v1091_v58  ;;  %v2421_v18 = vadd.f32 %v659_v38, %v2238_v54  ;;  %v1093_v16 = vrot.slane %v2404_v10, 4  ;;  %v2967_v24 = vrot.slane %v2966_v0, 1 }
  0xa7   : > { %1157 = vst [vmem:[%s2094_s24 + $0x30] sm:$0xff] %v1092_v29  ;;  %v1181_v22 = vsub.f32 %v1897_v26, %v1092_v29  ;;  %v661_v47 = vsel %vm601_vm1, %v2965_v11, %v2929_v12  ;;  %v2969_v56 = vrot.slane %v2968_v28, 1  ;;  %1204 = vst [vmem:[%s2113_s6 + $0x28] sm:$0xff] %v1180_v4  ;;  %v1095_v54 = vrot.slane %v2417_v45, 4  ;;  %v2970_v11 = vld [vmem:[#allocation19_spill] sm:$0xff] }
  0xa8   : > { %v1004_v26 = vadd.f32 %v976_v25, %v1960_v49  ;;  %v835_v8 = vrot.slane %v2421_v18, 4  ;;  %v2441_v38 = vadd.f32 %v661_v47, %v2255_v3  ;;  %v1094_v55 = vsel %vm794_vm2, %v1085_v57, %v1093_v16  ;;  %v2972_v25 = vld [vmem:[#allocation14_spill] sm:$0xff] }
  0xa9   : > { %v474_v52 = vsel %vm404_vm0, %v2969_v56, %v2967_v24  ;;  %v951_v4 = vadd.f32 %v2365_v34, %v2241_v21  ;;  %v2971_v24 = vrot.slane %v2970_v11, 1  ;;  %v2973_v56 = vrot.slane %v2972_v25, 1  ;;  %1205 = vst [vmem:[%s2113_s6 + $0x30] sm:$0xff] %v1181_v22  ;;  %1158 = vst [vmem:[%s2094_s24 + $0x38] sm:$0xff] %v1094_v55  ;;  %v2975_v22 = vld [vmem:[#allocation15_spill] sm:$0xff] }
  0xaa   : > { %v2449_v29 = vadd.f32 %v474_v52, %v2968_v28  ;;  %v1182_v3 = vsub.f32 %v1900_v27, %v1094_v55  ;;  %v1096_v61 = vsel %vm794_vm2, %v1087_v60, %v1095_v54  ;;  %v2466_v57 = vmul.f32 0.04, %v1004_v26 }
  0xab   : > { %v476_v12 = vsel %vm404_vm0, %v2973_v56, %v2971_v24  ;;  %v2974_v21 = vrot.slane %v2275_v59, 4  ;;  %1159 = vst [vmem:[%s2094_s24 + $0x40] sm:$0xff] %v1096_v61  ;;  %v1183_v28 = vsub.f32 %v2975_v22, %v1096_v61  ;;  %v837_v52 = vrot.slane %v2441_v38, 4  ;;  %v2976_v24 = vld [vmem:[#allocation20_spill] sm:$0xff] }
  0xac   : > { %v662_v62 = vrot.slane %v2449_v29, 2  ;;  %v1097_v60 = vrot.slane %v2466_v57, 4  ;;  %v2482_v26 = vadd.f32 %v476_v12, %v2972_v25  ;;  %v952_v55 = vadd.f32 %v2400_v13, %v2299_v7  ;;  %1206 = vst [vmem:[%s2113_s6 + $0x38] sm:$0xff] %v1182_v3 }
  0xad   : > { %v836_v47 = vsel %vm794_vm2, %v2974_v21, %v835_v8  ;;  %v2977_v56 = vrot.slane %v2976_v24, 1  ;;  %v2978_v61 = vrot.slane %v1851_v9, 1  ;;  %v2979_v12 = vrot.slane %v1957_v48, 2  ;;  %1207 = vst [vmem:[%s2113_s6 + $0x40] sm:$0xff] %v1183_v28 }
  0xae   : > { %v2476_v27 = vadd.f32 %v836_v47, %v2275_v59  ;;  %v838_v47 = vsel %vm794_vm2, %v829_v32, %v837_v52  ;;  %v664_v22 = vrot.slane %v2482_v26, 2 }
  0xaf   : > { %v478_v59 = vsel %vm404_vm0, %v2978_v61, %v2977_v56  ;;  %v663_v7 = vsel %vm601_vm1, %v2979_v12, %v662_v62  ;;  %v2511_v3 = vadd.f32 %v838_v47, %v2302_v39  ;;  %v2980_v56 = vld [vmem:[#allocation16_spill] sm:$0xff]  ;;  %v2981_v47 = vld [vmem:[#allocation21_spill] sm:$0xff] }
  0xb0   : > { %v977_v21 = vadd.f32 %v949_v41, %v2476_v27  ;;  %v2504_v25 = vadd.f32 %v478_v59, %v1851_v9  ;;  %v1098_v41 = vsel %vm794_vm2, %v1089_v53, %v1097_v60  ;;  %v2514_v32 = vadd.f32 %v663_v7, %v1957_v48 }
  0xb1   : > { %1160 = vst [vmem:[%s2094_s24 + $0x48] sm:$0xff] %v1098_v41  ;;  %v1184_v61 = vsub.f32 %v2980_v56, %v1098_v41  ;;  %v953_v59 = vadd.f32 %v2476_v27, %v2324_v46  ;;  %v978_v53 = vadd.f32 %v950_v19, %v2511_v3  ;;  %v665_v48 = vsel %vm601_vm1, %v656_v63, %v664_v22 }
  0xb2   : > { %v1005_v9 = vadd.f32 %v977_v21, %v1963_v50  ;;  %v666_v28 = vrot.slane %v2504_v25, 2  ;;  %v839_v39 = vrot.slane %v2514_v32, 4  ;;  %v2982_v12 = vrot.slane %v2981_v47, 1 }
  0xb3   : > { %v2983_v7 = vrot.slane %v1866_v14, 1  ;;  %v2536_v21 = vadd.f32 %v665_v48, %v2289_v2  ;;  %1208 = vst [vmem:[%s2113_s6 + $0x48] sm:$0xff] %v1184_v61  ;;  %v1006_v63 = vadd.f32 %v978_v53, %v1966_v51 }
  0xb4   : > { %v2533_v50 = vmul.f32 0.04, %v1005_v9  ;;  %v667_v46 = vsel %vm601_vm1, %v658_v15, %v666_v28  ;;  %v840_v2 = vsel %vm794_vm2, %v831_v23, %v839_v39  ;;  %v954_v9 = vadd.f32 %v2511_v3, %v2348_v1 }
  0xb5   : > { %v480_v41 = vsel %vm404_vm0, %v2983_v7, %v2982_v12  ;;  %v2554_v56 = vadd.f32 %v667_v46, %v2368_v30  ;;  %v841_v51 = vrot.slane %v2536_v21, 4  ;;  %v2564_v53 = vmul.f32 0.04, %v1006_v63  ;;  %v2987_v63 = vld [vmem:[#allocation17_spill] sm:$0xff] }
  0xb6   : > { %v2544_v19 = vadd.f32 %v480_v41, %v1866_v14  ;;  %v1099_v15 = vrot.slane %v2533_v50, 4  ;;  %v2560_v14 = vadd.f32 %v840_v2, %v2305_v40  ;;  %v2984_v23 = vrot.slane %v2966_v0, 1 }
  0xb7   : > { %v843_v48 = vrot.slane %v2554_v56, 4  ;;  %v2985_v1 = vrot.slane %v2970_v11, 1  ;;  %v842_v41 = vsel %vm794_vm2, %v833_v31, %v841_v51  ;;  %v2986_v46 = vrot.slane %v2390_v17, 2 }
  0xb8   : > { %v668_v61 = vrot.slane %v2544_v19, 2  ;;  %v2570_v30 = vadd.f32 %v2984_v23, %v2966_v0  ;;  %v1100_v40 = vsel %vm794_vm2, %v1091_v58, %v1099_v15  ;;  %v979_v7 = vadd.f32 %v951_v4, %v2560_v14  ;;  %v2988_v4 = vld [vmem:[#allocation12_spill] sm:$0xff] }
  0xb9   : > { %v2575_v12 = vadd.f32 %v2985_v1, %v2970_v11  ;;  %1161 = vst [vmem:[%s2094_s24 + $0x50] sm:$0xff] %v1100_v40  ;;  %v1185_v2 = vsub.f32 %v2987_v63, %v1100_v40  ;;  %v1101_v33 = vrot.slane %v2564_v53, 4  ;;  %v2595_v58 = vadd.f32 %v842_v41, %v2356_v20 }
  0xba   : > { %v669_v11 = vsel %vm601_vm1, %v2986_v46, %v668_v61  ;;  %v844_v31 = vsel %vm794_vm2, %v835_v8, %v843_v48  ;;  %v1007_v23 = vadd.f32 %v979_v7, %v2988_v4  ;;  %v670_v40 = vrot.slane %v2570_v30, 2 }
  0xbb   : > { %v2604_v1 = vadd.f32 %v844_v31, %v2421_v18  ;;  %v2607_v46 = vadd.f32 %v669_v11, %v2390_v17  ;;  %v1102_v20 = vsel %vm794_vm2, %v1093_v16, %v1101_v33  ;;  %v980_v41 = vadd.f32 %v952_v55, %v2595_v58  ;;  %1209 = vst [vmem:[%s2113_s6 + $0x50] sm:$0xff] %v1185_v2 }
  0xbc   : > { %v955_v8 = vadd.f32 %v2560_v14, %v2365_v34  ;;  %v672_v18 = vrot.slane %v2575_v12, 2  ;;  %1162 = vst [vmem:[%s2094_s24 + $0x58] sm:$0xff] %v1102_v20  ;;  %v1186_v17 = vsub.f32 %v1925_v35, %v1102_v20  ;;  %v2622_v7 = vmul.f32 0.04, %v1007_v23 }
  0xbd   : > { %v981_v11 = vadd.f32 %v953_v59, %v2604_v1  ;;  %v845_v10 = vrot.slane %v2607_v46, 4  ;;  %v1008_v16 = vadd.f32 %v980_v41, %v1838_v5  ;;  %v671_v55 = vsel %vm601_vm1, %v662_v62, %v670_v40 }
  0xbe   : > { %v673_v34 = vsel %vm601_vm1, %v664_v22, %v672_v18  ;;  %v956_v35 = vadd.f32 %v2595_v58, %v2400_v13  ;;  %v1103_v63 = vrot.slane %v2622_v7, 4  ;;  %v750_v62 = vadd.f32 %v671_v55, %v2449_v29  ;;  %1210 = vst [vmem:[%s2113_s6 + $0x58] sm:$0xff] %v1186_v17  ;;  %v1497_v7 = vld [vmem:[#allocation2 + $0x110] sm:$0xff] }
  0xbf   : > { %v1009_v59 = vadd.f32 %v981_v11, %v1841_v6  ;;  %v846_v5 = vsel %vm794_vm2, %v837_v52, %v845_v10  ;;  %v2644_v2 = vmul.f32 0.04, %v1008_v16  ;;  %v2650_v13 = vadd.f32 %v673_v34, %v2482_v26 }
  0xc0   : > { %v2647_v22 = vadd.f32 %v846_v5, %v2441_v38  ;;  %v2989_v6 = vrot.slane %v2976_v24, 1  ;;  %v1104_v52 = vsel %vm794_vm2, %v1095_v54, %v1103_v63  ;;  %v847_v4 = vrot.slane %v750_v62, 4  ;;  %v1495_v5 = vld [vmem:[#allocation2 + $0x100] sm:$0xff] }
  0xc1   : > { %v2660_v29 = vmul.f32 0.04, %v1009_v59  ;;  %v957_v38 = vadd.f32 %v2604_v1, %v2476_v27  ;;  %1163 = vst [vmem:[%s2094_s24 + $0x60] sm:$0xff] %v1104_v52  ;;  %v1187_v26 = vsub.f32 %v1928_v36, %v1104_v52  ;;  %v1105_v23 = vrot.slane %v2644_v2, 4 }
  0xc2   : > { %v559_v31 = vadd.f32 %v2989_v6, %v2976_v24  ;;  %v982_v24 = vadd.f32 %v954_v9, %v2647_v22  ;;  %v849_v20 = vrot.slane %v2650_v13, 4  ;;  %v848_v54 = vsel %vm794_vm2, %v839_v39, %v847_v4  ;;  %v2683_v9 = vld [vmem:[#allocation2 + $0xf8] sm:$0xff] }
  0xc3   : > { %v1107_v45 = vrot.slane %v2660_v29, 4  ;;  %v2990_v27 = vrot.slane %v2981_v47, 1  ;;  %v1106_v36 = vsel %vm794_vm2, %v1097_v60, %v1105_v23  ;;  %v927_v16 = vadd.f32 %v848_v54, %v2514_v32  ;;  %1211 = vst [vmem:[%s2113_s6 + $0x60] sm:$0xff] %v1187_v26  ;;  %v1501_v29 = vld [vmem:[#allocation2 + $0xe0] sm:$0xff] }
  0xc4   : > { %v674_v41 = vrot.slane %v559_v31, 2  ;;  %v1010_v11 = vadd.f32 %v2683_v9, %v982_v24  ;;  %v850_v39 = vsel %vm794_vm2, %v841_v51, %v849_v20  ;;  %1164 = vst [vmem:[%s2094_s24 + $0x68] sm:$0xff] %v1106_v36 }
  0xc5   : > { %v2676_v17 = vadd.f32 %v2990_v27, %v2981_v47  ;;  %v1188_v47 = vsub.f32 %v1931_v37, %v1106_v36  ;;  %v1108_v57 = vsel %vm794_vm2, %v1099_v15, %v1107_v45  ;;  %v928_v60 = vadd.f32 %v850_v39, %v2536_v21 }
  0xc6   : > { %v675_v55 = vsel %vm601_vm1, %v666_v28, %v674_v41  ;;  %1165 = vst [vmem:[%s2094_s24 + $0x70] sm:$0xff] %v1108_v57  ;;  %v1189_v32 = vsub.f32 %v1945_v42, %v1108_v57  ;;  %v2702_v51 = vmul.f32 0.04, %v1010_v11  ;;  %v983_v34 = vadd.f32 %v955_v8, %v927_v16  ;;  %v1496_v8 = vld [vmem:[#allocation2 + $0x108] sm:$0xff] }
  0xc7   : > { %v752_v37 = vadd.f32 %v675_v55, %v2504_v25  ;;  %v984_v59 = vadd.f32 %v956_v35, %v928_v60  ;;  %v676_v50 = vrot.slane %v2676_v17, 2  ;;  %v958_v15 = vadd.f32 %v2647_v22, %v2511_v3  ;;  %1212 = vst [vmem:[%s2113_s6 + $0x68] sm:$0xff] %v1188_v47  ;;  %v1498_v55 = vld [vmem:[#allocation2 + $0x118] sm:$0xff] }
  0xc8   : > { %v754_v21 = vadd.f32 %v670_v40, %v2570_v30  ;;  %v1109_v28 = vrot.slane %v2702_v51, 4  ;;  %v1011_v6 = vadd.f32 %v1495_v5, %v983_v34  ;;  %v959_v52 = vadd.f32 %v927_v16, %v2560_v14  ;;  %1213 = vst [vmem:[%s2113_s6 + $0x70] sm:$0xff] %v1189_v32 }
  0xc9   : > { %v851_v42 = vrot.slane %v752_v37, 4  ;;  %v1012_v25 = vadd.f32 %v1496_v8, %v984_v59  ;;  %v677_v35 = vsel %vm601_vm1, %v668_v61, %v676_v50  ;;  %v755_v3 = vadd.f32 %v672_v18, %v2575_v12  ;;  %v1499_v59 = vld [vmem:[#allocation2 + $0x128] sm:$0xf] }
  0xca   : > { %v855_v26 = vrot.slane %v754_v21, 4  ;;  %v1110_v30 = vsel %vm794_vm2, %v1101_v33, %v1109_v28  ;;  %v1039_v40 = vmul.f32 0.04, %v1011_v6  ;;  %v753_v24 = vadd.f32 %v677_v35, %v2544_v19 }
  0xcb   : > { %v852_v14 = vsel %vm794_vm2, %v843_v48, %v851_v42  ;;  %1166 = vst [vmem:[%s2094_s24 + $0x78] sm:$0xff] %v1110_v30  ;;  %v1190_v61 = vsub.f32 %v1948_v43, %v1110_v30  ;;  %v2730_v54 = vmul.f32 0.04, %v1012_v25  ;;  %v857_v36 = vrot.slane %v755_v3, 4  ;;  %v1502_v25 = vld [vmem:[#allocation2 + $0x130] sm:$0xf] }
  0xcc   : > { %v929_v12 = vadd.f32 %v852_v14, %v2554_v56  ;;  %v856_v53 = vsel %vm794_vm2, %v847_v4, %v855_v26  ;;  %v1111_v18 = vrot.slane %v1039_v40, 4  ;;  %v853_v33 = vrot.slane %v753_v24, 4  ;;  %v1503_v14 = vld [vmem:[#allocation2 + $0xd8] sm:$0xff] }
  0xcd   : > { %v931_v27 = vadd.f32 %v856_v53, %v750_v62  ;;  %v1113_v11 = vrot.slane %v2730_v54, 4  ;;  %v960_v19 = vadd.f32 %v928_v60, %v2595_v58  ;;  %v756_v16 = vadd.f32 %v674_v41, %v559_v31  ;;  %1214 = vst [vmem:[%s2113_s6 + $0x78] sm:$0xff] %v1190_v61  ;;  %v1506_v54 = vld [vmem:[#allocation2 + $0xf0] sm:$0xff] }
  0xce   : > { %v985_v48 = vadd.f32 %v957_v38, %v929_v12  ;;  %v1112_v43 = vsel %vm794_vm2, %v1103_v63, %v1111_v18  ;;  %v854_v56 = vsel %vm794_vm2, %v845_v10, %v853_v33  ;;  %v858_v62 = vsel %vm794_vm2, %v849_v20, %v857_v36 }
  0xcf   : > { %v987_v4 = vadd.f32 %v959_v52, %v931_v27  ;;  %1167 = vst [vmem:[%s2094_s24 + $0x80] sm:$0xff] %v1112_v43  ;;  %v1191_v39 = vsub.f32 %v1951_v44, %v1112_v43  ;;  %v1114_v58 = vsel %vm794_vm2, %v1105_v23, %v1113_v11  ;;  %v930_v31 = vadd.f32 %v854_v56, %v2607_v46 }
  0xd0   : > { %v1013_v63 = vadd.f32 %v1497_v7, %v985_v48  ;;  %1168 = vst [vmem:[%s2094_s24 + $0x88] sm:$0xff] %v1114_v58  ;;  %v1192_v10 = vsub.f32 %v1960_v49, %v1114_v58  ;;  %v932_v20 = vadd.f32 %v858_v62, %v2650_v13  ;;  %v859_v41 = vrot.slane %v756_v16, 4 }
  0xd1   : > { %v1015_v38 = vadd.f32 %v987_v4, %v2966_v0  ;;  %v986_v47 = vadd.f32 %v958_v15, %v930_v31  ;;  %v961_v57 = vadd.f32 %v929_v12, %v2604_v1  ;;  %v757_v2 = vadd.f32 %v676_v50, %v2676_v17  ;;  %1215 = vst [vmem:[%s2113_s6 + $0x80] sm:$0xff] %v1191_v39  ;;  %v1504_v12 = vld [vmem:[#allocation2 + $0x138] sm:$0xf] }
  0xd2   : > { %v1041_v44 = vmul.f32 0.04, %v1013_v63  ;;  %v988_v60 = vadd.f32 %v960_v19, %v932_v20  ;;  %v860_v46 = vsel %vm794_vm2, %v851_v42, %v859_v41  ;;  %1216 = vst [vmem:[%s2113_s6 + $0x88] sm:$0xff] %v1192_v10  ;;  %v962_v17 = vadd.f32 %v930_v31, %v2647_v22 }
  0xd3   : > { %v1043_v23 = vmul.f32 0.04, %v1015_v38  ;;  %v1014_v0 = vadd.f32 %v1498_v55, %v986_v47  ;;  %v933_v32 = vadd.f32 %v860_v46, %v752_v37  ;;  %v861_v13 = vrot.slane %v757_v2, 4  ;;  %v1500_v37 = vld [vmem:[#allocation2 + $0xd0] sm:$0xff] }
  0xd4   : > { %v1115_v49 = vrot.slane %v1041_v44, 4  ;;  %v1016_v1 = vadd.f32 %v1499_v59, %v988_v60 }
  0xd5   : > { %v1119_v34 = vrot.slane %v1043_v23, 4  ;;  %v1042_v15 = vmul.f32 0.04, %v1014_v0  ;;  %v989_v21 = vadd.f32 %v961_v57, %v933_v32  ;;  %v862_v5 = vsel %vm794_vm2, %v853_v33, %v861_v13 }
  0xd6   : > { %v1116_v50 = vsel %vm794_vm2, %v1107_v45, %v1115_v49  ;;  %v1044_v52 = vmul.f32 0.04, %v1016_v1  ;;  %v934_v8 = vadd.f32 %v862_v5, %v753_v24 }
  0xd7   : > { %1169 = vst [vmem:[%s2094_s24 + $0x90] sm:$0xff] %v1116_v50  ;;  %v1193_v6 = vsub.f32 %v1500_v37, %v1116_v50  ;;  %v1120_v42 = vsel %vm794_vm2, %v1111_v18, %v1119_v34  ;;  %v1117_v22 = vrot.slane %v1042_v15, 4  ;;  %v1017_v35 = vadd.f32 %v1502_v25, %v989_v21 }
  0xd8   : > { %1171 = vst [vmem:[%s2094_s24 + $0xa0] sm:$0xff] %v1120_v42  ;;  %v1195_v45 = vsub.f32 %v1501_v29, %v1120_v42  ;;  %v1121_v26 = vrot.slane %v1044_v52, 4  ;;  %v990_v3 = vadd.f32 %v962_v17, %v934_v8 }
  0xd9   : > { %1217 = vst [vmem:[%s2113_s6 + $0x90] sm:$0xff] %v1193_v6  ;;  %v1118_v30 = vsel %vm794_vm2, %v1109_v28, %v1117_v22  ;;  %v1045_v40 = vmul.f32 0.04, %v1017_v35  ;;  %v1505_v28 = vld [vmem:[#allocation2 + $0xe8] sm:$0xff] }
  0xda   : > { %1219 = vst [vmem:[%s2113_s6 + $0xa0] sm:$0xff] %v1195_v45  ;;  %1170 = vst [vmem:[%s2094_s24 + $0x98] sm:$0xff] %v1118_v30  ;;  %v1194_v24 = vsub.f32 %v1503_v14, %v1118_v30  ;;  %v1122_v61 = vsel %vm794_vm2, %v1113_v11, %v1121_v26  ;;  %v1018_v51 = vadd.f32 %v1504_v12, %v990_v3 }
  0xdb   : > { %1172 = vst [vmem:[%s2094_s24 + $0xa8] sm:$0xff] %v1122_v61  ;;  %v1196_v53 = vsub.f32 %v1505_v28, %v1122_v61  ;;  %v1123_v18 = vrot.slane %v1045_v40, 4 }
  0xdc   : > { %v1046_v33 = vmul.f32 0.04, %v1018_v51  ;;  %1218 = vst [vmem:[%s2113_s6 + $0x98] sm:$0xff] %v1194_v24 }
  0xdd   : > { %v1124_v27 = vsel %vm794_vm2, %v1115_v49, %v1123_v18  ;;  %1220 = vst [vmem:[%s2113_s6 + $0xa8] sm:$0xff] %v1196_v53 }
  0xde   : > { %1173 = vst [vmem:[%s2094_s24 + $0xb0] sm:$0xff] %v1124_v27  ;;  %v1197_v36 = vsub.f32 %v1506_v54, %v1124_v27  ;;  %v1125_v11 = vrot.slane %v1046_v33, 4 }
  0xe0   : > { %v1126_v48 = vsel %vm794_vm2, %v1117_v22, %v1125_v11  ;;  %1221 = vst [vmem:[%s2113_s6 + $0xb0] sm:$0xff] %v1197_v36 }
  0xe1   : > { %1174 = vst [vmem:[%s2094_s24 + $0xb8] sm:$0xff] %v1126_v48  ;;  %v1198_v19 = vsub.f32 %v2683_v9, %v1126_v48 }
  0xe2   : > { %1550 = shalt.err (!%p1547_p4)
}
  0xe3   : > { %s1551_s24 = scalar_lea.hbm %s2793_s27, 3072  ;;  %s1555_s26 = scalar_lea.hbm %s2893_s2, 12288 }
  0xe4   : > { %p1552_p6 = scmp.ne.s32.totalorder %s2793_s27, %s1551_s24  ;;  %p1556_p1 = scmp.lt.u32.totalorder %s2793_s27, %s2893_s2 }
  0xe5   : > { %p1557_p3 = scmp.lt.u32.totalorder %s1555_s26, %s1551_s24  ;;  %p1559_p8 = scmp.lt.u32.totalorder %s1551_s24, %s2793_s27 }
  0xe6   : > { %p1553_p7 = pnand %p1552_p6, %p2991_p9 }
  0xe7   : > { %p1558_p5 = por %p1557_p3, %p1556_p1 }
  0xe8   : > { %p1554_p10 = pneg %p1553_p7 }
  0xe9   : > { %p1560_p12 = por %p1559_p8, %p1558_p5 }
  0xeb   : > { %p1561_p0 = pnand %p1560_p12, %p1554_p10 }
  0xed   : > { %1564 = shalt.err (!%p1561_p0)
}
  0xee   : > { %s1674_s29 = smov 512   ;;  %s1675_s17 = smov 1024   ;;  %1222 = vst [vmem:[%s2113_s6 + $0xb8] sm:$0xff] %v1198_v19 }
  0xef   : > { %s1676_s21 = smov 32   ;;  %s1224_s12 = scalar_lea.sflag [#allocation5], %s1821_s5 }
  0xf0   : > { %1408 = dma.vmem_to_hbm [thread:$0]  (%p2991_p9), %s2795_s18, 3072, %s2793_s27, %s1229_s8, %s1674_s29, %s1675_s17, %s1676_s21  }
  0xf1   : > { %s1565_s24 = scalar_lea.vmem %s2806_s13, 3072  ;;  %s1677_s23 = smov [#allocation6]  }
  0xf2   : > { %p1566_p11 = scmp.ne.s32.totalorder %s2806_s13, %s1565_s24  ;;  %s1569_s22 = sshll.u32 %s1677_s23, 4  ;;  %s1570_s22 = int_to_ptr.vmem [resolvable:$false] %s1569_s22 }
  0xf3   : > { %s1571_s26 = scalar_lea.vmem %s1570_s22, 6144  ;;  %p1572_p4 = scmp.lt.s32.totalorder %s2806_s13, %s1570_s22 }
  0xf4   : > { %p1567_p13 = pnand %p1566_p11, %p2991_p9  ;;  %p1573_p6 = scmp.lt.s32.totalorder %s1571_s26, %s1565_s24 }
  0xf6   : > { %p1568_p2 = pneg %p1567_p13  ;;  %p1574_p7 = por %p1573_p6, %p1572_p4 }
  0xf8   : > { %p1575_p10 = pnand %p1574_p7, %p1568_p2 }
  0xfa   : > { %1578 = shalt.err (!%p1575_p10)
}
  0xfb   : > { %s1579_s6 = scalar_lea.hbm %s2804_s7, 3072  ;;  %s1583_s8 = scalar_lea.hbm %s2892_s1, 12288 }
  0xfc   : > { %p1580_p1 = scmp.ne.s32.totalorder %s2804_s7, %s1579_s6  ;;  %p1584_p8 = scmp.lt.u32.totalorder %s2804_s7, %s2892_s1 }
  0xfd   : > { %p1585_p12 = scmp.lt.u32.totalorder %s1583_s8, %s1579_s6  ;;  %p1587_p11 = scmp.lt.u32.totalorder %s1579_s6, %s2804_s7 }
  0xfe   : > { %p1581_p3 = pnand %p1580_p1, %p2991_p9 }
  0xff   : > { %p1586_p0 = por %p1585_p12, %p1584_p8 }
 0x100   : > { %p1582_p5 = pneg %p1581_p3 }
 0x101   : > { %p1588_p13 = por %p1587_p11, %p1586_p0 }
 0x103   : > { %p1589_p2 = pnand %p1588_p13, %p1582_p5 }
 0x105   : > { %1592 = shalt.err (!%p1589_p2)
}
 0x106   : > { %1407 = dma.vmem_to_hbm [thread:$0]  (%p2991_p9), %s2806_s13, 3072, %s2804_s7, %s1224_s12, %s1674_s29, %s1675_s17, %s1676_s21  }
 0x107 PF: > { %p1423_p4 = scmp.ge.s32.totalorder %s1667_s16, 2  ;;  %s1277_s24 = sand.u32 1, %s1639_s9  }
 0x108   : > { %p2992_p6 = scmp.ne.s32.totalorder %s2933_s28, 0  ;;  %s1278_s23 = scalar_lea.sflag [#allocation5], %s1277_s24 }
 0x10a   : > { %p1416_p7 = pnand %p1423_p4, %p2992_p6 }
 0x10c   : > { %1630 = dma.done.wait (!%p1416_p7), %s1278_s23, 3072  }
 0x10d   : > { %1632 = vsyncadd (!%p1416_p7), %s1278_s23, 4294964224  ;;  %s1287_s25 = scalar_lea.sflag [#allocation8], %s1277_s24 }
 0x10e   : > { %1634 = dma.done.wait (!%p1416_p7), %s1287_s25, 3072  }
 0x10f   : > { %1636 = vsyncadd (!%p1416_p7), %s1287_s25, 4294964224  ;;  %s22_s16 = sadd.s32 1, %s1667_s16   ;;  %s2993_s9 = smov %s1643_s10 }
 0x110   : > { %p19_p10 = scmp.ge.s32.totalorder %s22_s16, 6   ;;  %s2994_s10 = smov %s1647_s11 }
 0x111   : > { %s2995_s11 = smov %s1771_s30  ;;  %s2996_s12 = smov %s1659_s14 }
 0x112   : > { %s2997_s13 = smov %s1663_s15  ;;  %s2998_s14 = smov %s3001_s19 }
 0x113   : > { %s2999_s15 = smov %s3005_s20  ;;  %21 = sbr.rel (!%p19_p10) target bundleno = 9 (0x9), region = 86 }
 0x11a   :  { %1292 = vsyncpa [#allocation4], 1 }
 0x11b   :  { %1294 = vsyncpa [#allocation4 + $0x1], 1 }
 0x11c   :  { %1295 = vsyncpa [#allocation5], 1 }
 0x11d   :  { %1297 = vsyncpa [#allocation5 + $0x1], 1 }
 0x11e   :  { %1298 = vsyncpa [#allocation8], 1 }
 0x11f   :  { %1300 = vsyncpa [#allocation8 + $0x1], 1 }

</bundles_post_ra>
